<compile_context>
chip_gen: v6e
topology: v6e:2x2x1
jax: 0.10.0
libtpu: 0.0.40
codegen_flags: <defaults>
</compile_context>

<pallas_src>
import functools

import jax
import jax.numpy as jnp
from jax import lax
from jax.experimental import pallas as pl
from jax.experimental.pallas import tpu as pltpu


def _mha_kernel(q_ref, k_ref, v_ref, wq_ref, wk_ref, wv_ref, wfc_ref,
                g_ref, b_ref, o_ref, attn_ref, *, n_head, d_k, d_v):
    # Compute (MXU-operand) dtype = model dtype; accumulation is always f32.
    cdt = q_ref.dtype

    q_in = q_ref[...].astype(jnp.float32)   # (Lq, d_model)  residual + LN stats in f32
    k_in = k_ref[...]                       # (Lk, d_model)
    v_in = v_ref[...]                       # (Lk, d_model)

    # --- pre-LayerNorm on q (eps=1e-6, biased variance, affine) ---
    mean = jnp.mean(q_in, axis=-1, keepdims=True)
    var = jnp.mean((q_in - mean) ** 2, axis=-1, keepdims=True)
    qn = (q_in - mean) * lax.rsqrt(var + 1e-6)
    qn = qn * g_ref[...] + b_ref[...]

    # --- wide 2-D projections: one full-depth MXU matmul each.
    #     (softmax scale 1/sqrt(d_k) is already folded into wq_ref)
    Q2 = jnp.dot(qn.astype(cdt), wq_ref[...],
                 preferred_element_type=jnp.float32).astype(cdt)   # (Lq, H*dk)
    K2 = jnp.dot(k_in, wk_ref[...],
                 preferred_element_type=jnp.float32).astype(cdt)   # (Lk, H*dk)
    V2 = jnp.dot(v_in, wv_ref[...],
                 preferred_element_type=jnp.float32).astype(cdt)   # (Lk, H*dv)

    # --- one-time relayout to head-major (H, L, d); every matmul below is
    #     head-batched, no per-head lane slicing inside a compute loop.
    Qh = jnp.stack([Q2[:, h * d_k:(h + 1) * d_k] for h in range(n_head)], axis=0)
    Kh = jnp.stack([K2[:, h * d_k:(h + 1) * d_k] for h in range(n_head)], axis=0)
    Vh = jnp.stack([V2[:, h * d_v:(h + 1) * d_v] for h in range(n_head)], axis=0)

    # --- scores + softmax (f32 stats), batched over heads ---
    s = jnp.einsum('hqd,hkd->hqk', Qh, Kh,
                   preferred_element_type=jnp.float32)             # (H, Lq, Lk)
    s = s - jnp.max(s, axis=-1, keepdims=True)
    p = jnp.exp(s)
    inv = pl.reciprocal(jnp.sum(p, axis=-1, keepdims=True), approx=False)
    p = p * inv
    attn_ref[...] = p.astype(attn_ref.dtype)

    # --- context + fused output projection, batched over heads ---
    ctx = jnp.einsum('hqk,hkd->hqd', p.astype(cdt), Vh,
                     preferred_element_type=jnp.float32)           # (H, Lq, dv)
    out_h = jnp.einsum('hqd,hdm->hqm', ctx.astype(cdt), wfc_ref[...],
                       preferred_element_type=jnp.float32)         # (H, Lq, d_model)
    o_ref[...] = (jnp.sum(out_h, axis=0) + q_in).astype(o_ref.dtype)


def prepare_params(wq, wk, wv, wfc, gamma, beta, *, n_head, d_k, d_v,
                   param_dtype=None):
    """One-time parameter prep (call at init time, not per forward):
    transpose to (in, out), fold softmax scale into Wq, make Wfc head-major."""
    d_model = wq.shape[1]
    scale = 1.0 / float(d_k) ** 0.5
    wq_t = jnp.asarray(wq).T * scale                          # (d_model, H*dk)
    wk_t = jnp.asarray(wk).T                                  # (d_model, H*dk)
    wv_t = jnp.asarray(wv).T                                  # (d_model, H*dv)
    wfc_h = jnp.asarray(wfc).T.reshape(n_head, d_v, d_model)  # (H, dv, d_model)
    gamma2 = jnp.asarray(gamma).reshape(1, d_model)
    beta2 = jnp.asarray(beta).reshape(1, d_model)
    params = (wq_t, wk_t, wv_t, wfc_h, gamma2, beta2)
    if param_dtype is not None:
        params = tuple(p.astype(param_dtype) for p in params)
    return params


def _vmem_limit_bytes():
    # ~3/4 of physical VMEM: ~96 MiB on v5e/v6e (128 MiB), ~48 MiB on v7x (64 MiB/TC).
    try:
        cap = pltpu.get_tpu_info().vmem_capacity_bytes
    except Exception:
        cap = 64 * 1024 * 1024
    return int(cap) * 3 // 4


def pre_ln_mha_prepared(q, k, v, wq_t, wk_t, wv_t, wfc_h, gamma2, beta2,
                        *, n_head, d_k, d_v):
    sz_b, len_q, d_model = q.shape
    len_k = k.shape[1]
    assert v.shape[1] == len_k

    kernel = functools.partial(_mha_kernel, n_head=n_head, d_k=d_k, d_v=d_v)
    full2 = lambda b: (0, 0)
    full3 = lambda b: (0, 0, 0)

    out, attn = pl.pallas_call(
        kernel,
        out_shape=(
            jax.ShapeDtypeStruct((sz_b, len_q, d_model), q.dtype),
            # attn in the model dtype (halves writeback when running bf16).
            jax.ShapeDtypeStruct((sz_b, n_head, len_q, len_k), q.dtype),
        ),
        grid_spec=pltpu.PrefetchScalarGridSpec(
            num_scalar_prefetch=0,
            grid=(sz_b,),
            in_specs=[
                pl.BlockSpec((None, len_q, d_model), lambda b: (b, 0, 0)),   # q
                pl.BlockSpec((None, len_k, d_model), lambda b: (b, 0, 0)),   # k
                pl.BlockSpec((None, len_k, d_model), lambda b: (b, 0, 0)),   # v
                # Grid-invariant weights (block index never changes).
                pl.BlockSpec((d_model, n_head * d_k), full2),                # Wq^T*scale
                pl.BlockSpec((d_model, n_head * d_k), full2),                # Wk^T
                pl.BlockSpec((d_model, n_head * d_v), full2),                # Wv^T
                pl.BlockSpec((n_head, d_v, d_model), full3),                 # Wfc head-major
                pl.BlockSpec((1, d_model), full2),                           # gamma
                pl.BlockSpec((1, d_model), full2),                           # beta
            ],
            out_specs=(
                pl.BlockSpec((None, len_q, d_model), lambda b: (b, 0, 0)),
                pl.BlockSpec((None, n_head, len_q, len_k), lambda b: (b, 0, 0, 0)),
            ),
        ),
        compiler_params=pltpu.CompilerParams(
            dimension_semantics=("parallel",),
            vmem_limit_bytes=_vmem_limit_bytes(),
        ),
    )(q, k, v, wq_t, wk_t, wv_t, wfc_h, gamma2, beta2)
    return out, attn


def pre_ln_mha(q, k, v, wq, wk, wv, wfc, gamma, beta, *, n_head, d_k, d_v):
    """q,k,v: (B, L, d_model). Weights in PyTorch (out, in) layout.
    Returns (out, attn) like PreLNMultiHeadAttention.forward (mask=None)."""
    params = prepare_params(wq, wk, wv, wfc, gamma, beta,
                            n_head=n_head, d_k=d_k, d_v=d_v)
    return pre_ln_mha_prepared(q, k, v, *params,
                               n_head=n_head, d_k=d_k, d_v=d_v)


def _reference(q, k, v, wq, wk, wv, wfc, gamma, beta, n_head, d_k, d_v):
    sz_b, len_q, d_model = q.shape
    residual = q
    mean = jnp.mean(q, -1, keepdims=True)
    var = jnp.mean((q - mean) ** 2, -1, keepdims=True)
    qn = (q - mean) / jnp.sqrt(var + 1e-6) * gamma + beta
    Q = (qn @ wq.T).reshape(sz_b, len_q, n_head, d_k).transpose(0, 2, 1, 3)
    K = (k @ wk.T).reshape(sz_b, -1, n_head, d_k).transpose(0, 2, 1, 3)
    V = (v @ wv.T).reshape(sz_b, -1, n_head, d_v).transpose(0, 2, 1, 3)
    attn = jnp.einsum('bhqd,bhkd->bhqk', Q / (float(d_k) ** 0.5), K)
    attn = jax.nn.softmax(attn, axis=-1)
    ctx = jnp.einsum('bhqk,bhkd->bhqd', attn, V)
    ctx = ctx.transpose(0, 2, 1, 3).reshape(sz_b, len_q, n_head * d_v)
    out = ctx @ wfc.T + residual
    return out, attn


if __name__ == "__main__":
    # Small shapes consistent with the module's forward.
    sz_b, seq = 2, 8
    n_head, d_k, d_v = 4, 8, 8
    d_model = 32

    key = jax.random.PRNGKey(0)
    ks = jax.random.split(key, 7)
    q = jax.random.normal(ks[0], (sz_b, seq, d_model), jnp.float32)
    k = jax.random.normal(ks[1], (sz_b, seq, d_model), jnp.float32)
    v = jax.random.normal(ks[2], (sz_b, seq, d_model), jnp.float32)
    # PyTorch Linear layout: (out_features, in_features), bias=False.
    wq = jax.random.normal(ks[3], (n_head * d_k, d_model), jnp.float32) * 0.1
    wk = jax.random.normal(ks[4], (n_head * d_k, d_model), jnp.float32) * 0.1
    wv = jax.random.normal(ks[5], (n_head * d_v, d_model), jnp.float32) * 0.1
    wfc = jax.random.normal(ks[6], (d_model, n_head * d_v), jnp.float32) * 0.1
    gamma = jnp.ones((d_model,), jnp.float32)   # LayerNorm default init
    beta = jnp.zeros((d_model,), jnp.float32)

    out, attn = pre_ln_mha(q, k, v, wq, wk, wv, wfc, gamma, beta,
                           n_head=n_head, d_k=d_k, d_v=d_v)
    out, attn = jax.block_until_ready((out, attn))

    ref_out, ref_attn = _reference(q, k, v, wq, wk, wv, wfc, gamma, beta,
                                   n_head, d_k, d_v)
    assert out.shape == (sz_b, seq, d_model)
    assert attn.shape == (sz_b, n_head, seq, seq)
    assert jnp.allclose(out, ref_out, atol=1e-4, rtol=1e-4), "output mismatch"
    assert jnp.allclose(attn, ref_attn, atol=1e-5, rtol=1e-4), "attn mismatch"

    print("KERNEL_OK")
</pallas_src>

<mosaic_0001>
module attributes {stable_mosaic.version = 11 : i64} {
  func.func @_mha_kernel(%arg0: i32, %arg1: memref<1x8x32xf32, #tpu.memory_space<vmem>>, %arg2: memref<1x8x32xf32, #tpu.memory_space<vmem>>, %arg3: memref<1x8x32xf32, #tpu.memory_space<vmem>>, %arg4: memref<32x32xf32, #tpu.memory_space<vmem>>, %arg5: memref<32x32xf32, #tpu.memory_space<vmem>>, %arg6: memref<32x32xf32, #tpu.memory_space<vmem>>, %arg7: memref<4x8x32xf32, #tpu.memory_space<vmem>>, %arg8: memref<1x32xf32, #tpu.memory_space<vmem>>, %arg9: memref<1x32xf32, #tpu.memory_space<vmem>>, %arg10: memref<1x8x32xf32, #tpu.memory_space<vmem>>, %arg11: memref<1x4x8x8xf32, #tpu.memory_space<vmem>>) attributes {dimension_semantics = [#tpu.dimension_semantics<parallel>], iteration_bounds = array<i64: 2>, scalar_prefetch = 0 : i64, scratch_operands = 0 : i64, tpu.core_type = #tpu.core_type<tc>, window_params = [{transform_indices = @transform_0, window_bounds = array<i64: 1, 8, 32>}, {transform_indices = @transform_1, window_bounds = array<i64: 1, 8, 32>}, {transform_indices = @transform_2, window_bounds = array<i64: 1, 8, 32>}, {pipeline_mode = #tpu.pipeline_mode<synchronous>, transform_indices = @transform_3, window_bounds = array<i64: 32, 32>}, {pipeline_mode = #tpu.pipeline_mode<synchronous>, transform_indices = @transform_4, window_bounds = array<i64: 32, 32>}, {pipeline_mode = #tpu.pipeline_mode<synchronous>, transform_indices = @transform_5, window_bounds = array<i64: 32, 32>}, {pipeline_mode = #tpu.pipeline_mode<synchronous>, transform_indices = @transform_6, window_bounds = array<i64: 4, 8, 32>}, {pipeline_mode = #tpu.pipeline_mode<synchronous>, transform_indices = @transform_7, window_bounds = array<i64: 1, 32>}, {pipeline_mode = #tpu.pipeline_mode<synchronous>, transform_indices = @transform_8, window_bounds = array<i64: 1, 32>}, {transform_indices = @transform_9, window_bounds = array<i64: 1, 8, 32>}, {transform_indices = @transform_10, window_bounds = array<i64: 1, 4, 8, 8>}]} {
    %c0 = arith.constant 0 : index
    %c0_0 = arith.constant 0 : index
    %c0_1 = arith.constant 0 : index
    %0 = vector.load %arg1[%c0, %c0_0, %c0_1] : memref<1x8x32xf32, #tpu.memory_space<vmem>>, vector<1x8x32xf32>
    %1 = vector.shape_cast %0 : vector<1x8x32xf32> to vector<8x32xf32>
    %c0_2 = arith.constant 0 : index
    %c0_3 = arith.constant 0 : index
    %c0_4 = arith.constant 0 : index
    %2 = vector.load %arg2[%c0_2, %c0_3, %c0_4] : memref<1x8x32xf32, #tpu.memory_space<vmem>>, vector<1x8x32xf32>
    %3 = vector.shape_cast %2 : vector<1x8x32xf32> to vector<8x32xf32>
    %c0_5 = arith.constant 0 : index
    %c0_6 = arith.constant 0 : index
    %c0_7 = arith.constant 0 : index
    %4 = vector.load %arg3[%c0_5, %c0_6, %c0_7] : memref<1x8x32xf32, #tpu.memory_space<vmem>>, vector<1x8x32xf32>
    %5 = vector.shape_cast %4 : vector<1x8x32xf32> to vector<8x32xf32>
    %cst = arith.constant dense<0.000000e+00> : vector<8xf32>
    %6 = vector.multi_reduction <add>, %1, %cst [1] : vector<8x32xf32> to vector<8xf32>
    %7 = vector.shape_cast %6 : vector<8xf32> to vector<8x1xf32>
    %cst_8 = arith.constant 3.200000e+01 : f32
    %8 = vector.broadcast %cst_8 : f32 to vector<8x1xf32>
    %9 = arith.divf %7, %8 : vector<8x1xf32>
    %10 = vector.broadcast %9 : vector<8x1xf32> to vector<8x32xf32>
    %11 = arith.subf %1, %10 : vector<8x32xf32>
    %12 = arith.mulf %11, %11 : vector<8x32xf32>
    %cst_9 = arith.constant dense<0.000000e+00> : vector<8xf32>
    %13 = vector.multi_reduction <add>, %12, %cst_9 [1] : vector<8x32xf32> to vector<8xf32>
    %14 = vector.shape_cast %13 : vector<8xf32> to vector<8x1xf32>
    %cst_10 = arith.constant 3.200000e+01 : f32
    %15 = vector.broadcast %cst_10 : f32 to vector<8x1xf32>
    %16 = arith.divf %14, %15 : vector<8x1xf32>
    %17 = vector.broadcast %9 : vector<8x1xf32> to vector<8x32xf32>
    %18 = arith.subf %1, %17 : vector<8x32xf32>
    %cst_11 = arith.constant 9.99999997E-7 : f32
    %19 = vector.broadcast %cst_11 : f32 to vector<8x1xf32>
    %20 = arith.addf %16, %19 : vector<8x1xf32>
    %21 = math.rsqrt %20 : vector<8x1xf32>
    %22 = vector.broadcast %21 : vector<8x1xf32> to vector<8x32xf32>
    %23 = arith.mulf %18, %22 : vector<8x32xf32>
    %c0_12 = arith.constant 0 : index
    %c0_13 = arith.constant 0 : index
    %24 = vector.load %arg8[%c0_12, %c0_13] : memref<1x32xf32, #tpu.memory_space<vmem>>, vector<1x32xf32>
    %25 = vector.broadcast %24 : vector<1x32xf32> to vector<8x32xf32>
    %26 = arith.mulf %23, %25 : vector<8x32xf32>
    %c0_14 = arith.constant 0 : index
    %c0_15 = arith.constant 0 : index
    %27 = vector.load %arg9[%c0_14, %c0_15] : memref<1x32xf32, #tpu.memory_space<vmem>>, vector<1x32xf32>
    %28 = vector.broadcast %27 : vector<1x32xf32> to vector<8x32xf32>
    %29 = arith.addf %26, %28 : vector<8x32xf32>
    %c0_16 = arith.constant 0 : index
    %c0_17 = arith.constant 0 : index
    %30 = vector.load %arg4[%c0_16, %c0_17] : memref<32x32xf32, #tpu.memory_space<vmem>>, vector<32x32xf32>
    %cst_18 = arith.constant dense<0.000000e+00> : vector<8x32xf32>
    %31 = tpu.matmul %29, %30, %cst_18 {dimension_numbers = #tpu.dot_dimension_numbers<[1], [0], [0], [1], [0, 0, 1, 1], [], []>} : vector<8x32xf32>, vector<32x32xf32>, vector<8x32xf32> -> vector<8x32xf32>
    %c0_19 = arith.constant 0 : index
    %c0_20 = arith.constant 0 : index
    %32 = vector.load %arg5[%c0_19, %c0_20] : memref<32x32xf32, #tpu.memory_space<vmem>>, vector<32x32xf32>
    %cst_21 = arith.constant dense<0.000000e+00> : vector<8x32xf32>
    %33 = tpu.matmul %3, %32, %cst_21 {dimension_numbers = #tpu.dot_dimension_numbers<[1], [0], [0], [1], [0, 0, 1, 1], [], []>} : vector<8x32xf32>, vector<32x32xf32>, vector<8x32xf32> -> vector<8x32xf32>
    %c0_22 = arith.constant 0 : index
    %c0_23 = arith.constant 0 : index
    %34 = vector.load %arg6[%c0_22, %c0_23] : memref<32x32xf32, #tpu.memory_space<vmem>>, vector<32x32xf32>
    %cst_24 = arith.constant dense<0.000000e+00> : vector<8x32xf32>
    %35 = tpu.matmul %5, %34, %cst_24 {dimension_numbers = #tpu.dot_dimension_numbers<[1], [0], [0], [1], [0, 0, 1, 1], [], []>} : vector<8x32xf32>, vector<32x32xf32>, vector<8x32xf32> -> vector<8x32xf32>
    %36 = vector.extract_strided_slice %31 {offsets = [0, 0], sizes = [8, 8], strides = [1, 1]} : vector<8x32xf32> to vector<8x8xf32>
    %37 = vector.extract_strided_slice %31 {offsets = [0, 8], sizes = [8, 8], strides = [1, 1]} : vector<8x32xf32> to vector<8x8xf32>
    %38 = vector.extract_strided_slice %31 {offsets = [0, 16], sizes = [8, 8], strides = [1, 1]} : vector<8x32xf32> to vector<8x8xf32>
    %39 = vector.extract_strided_slice %31 {offsets = [0, 24], sizes = [8, 8], strides = [1, 1]} : vector<8x32xf32> to vector<8x8xf32>
    %40 = vector.shape_cast %36 : vector<8x8xf32> to vector<1x8x8xf32>
    %41 = vector.shape_cast %37 : vector<8x8xf32> to vector<1x8x8xf32>
    %42 = vector.shape_cast %38 : vector<8x8xf32> to vector<1x8x8xf32>
    %43 = vector.shape_cast %39 : vector<8x8xf32> to vector<1x8x8xf32>
    %44 = tpu.concatenate %40, %41, %42, %43 in 0 : vector<1x8x8xf32>, vector<1x8x8xf32>, vector<1x8x8xf32>, vector<1x8x8xf32> -> vector<4x8x8xf32>
    %45 = vector.extract_strided_slice %33 {offsets = [0, 0], sizes = [8, 8], strides = [1, 1]} : vector<8x32xf32> to vector<8x8xf32>
    %46 = vector.extract_strided_slice %33 {offsets = [0, 8], sizes = [8, 8], strides = [1, 1]} : vector<8x32xf32> to vector<8x8xf32>
    %47 = vector.extract_strided_slice %33 {offsets = [0, 16], sizes = [8, 8], strides = [1, 1]} : vector<8x32xf32> to vector<8x8xf32>
    %48 = vector.extract_strided_slice %33 {offsets = [0, 24], sizes = [8, 8], strides = [1, 1]} : vector<8x32xf32> to vector<8x8xf32>
    %49 = vector.shape_cast %45 : vector<8x8xf32> to vector<1x8x8xf32>
    %50 = vector.shape_cast %46 : vector<8x8xf32> to vector<1x8x8xf32>
    %51 = vector.shape_cast %47 : vector<8x8xf32> to vector<1x8x8xf32>
    %52 = vector.shape_cast %48 : vector<8x8xf32> to vector<1x8x8xf32>
    %53 = tpu.concatenate %49, %50, %51, %52 in 0 : vector<1x8x8xf32>, vector<1x8x8xf32>, vector<1x8x8xf32>, vector<1x8x8xf32> -> vector<4x8x8xf32>
    %54 = vector.extract_strided_slice %35 {offsets = [0, 0], sizes = [8, 8], strides = [1, 1]} : vector<8x32xf32> to vector<8x8xf32>
    %55 = vector.extract_strided_slice %35 {offsets = [0, 8], sizes = [8, 8], strides = [1, 1]} : vector<8x32xf32> to vector<8x8xf32>
    %56 = vector.extract_strided_slice %35 {offsets = [0, 16], sizes = [8, 8], strides = [1, 1]} : vector<8x32xf32> to vector<8x8xf32>
    %57 = vector.extract_strided_slice %35 {offsets = [0, 24], sizes = [8, 8], strides = [1, 1]} : vector<8x32xf32> to vector<8x8xf32>
    %58 = vector.shape_cast %54 : vector<8x8xf32> to vector<1x8x8xf32>
    %59 = vector.shape_cast %55 : vector<8x8xf32> to vector<1x8x8xf32>
    %60 = vector.shape_cast %56 : vector<8x8xf32> to vector<1x8x8xf32>
    %61 = vector.shape_cast %57 : vector<8x8xf32> to vector<1x8x8xf32>
    %62 = tpu.concatenate %58, %59, %60, %61 in 0 : vector<1x8x8xf32>, vector<1x8x8xf32>, vector<1x8x8xf32>, vector<1x8x8xf32> -> vector<4x8x8xf32>
    "tpu.trace_start"() <{level = 10 : i32, message = "hqd,hkd->hqk"}> : () -> ()
    %cst_25 = arith.constant dense<0.000000e+00> : vector<4x8x8xf32>
    %63 = tpu.matmul %44, %53, %cst_25 {dimension_numbers = #tpu.dot_dimension_numbers<[2], [2], [1], [1], [0, 0, 0, 1, 1, 1], [0], [0]>} : vector<4x8x8xf32>, vector<4x8x8xf32>, vector<4x8x8xf32> -> vector<4x8x8xf32>
    "tpu.trace_stop"() : () -> ()
    %cst_26 = arith.constant dense<0xFF800000> : vector<4x8xf32>
    %64 = vector.multi_reduction <maximumf>, %63, %cst_26 [2] : vector<4x8x8xf32> to vector<4x8xf32>
    %65 = vector.shape_cast %64 : vector<4x8xf32> to vector<4x8x1xf32>
    %66 = vector.broadcast %65 : vector<4x8x1xf32> to vector<4x8x8xf32>
    %67 = arith.subf %63, %66 : vector<4x8x8xf32>
    %68 = math.exp %67 : vector<4x8x8xf32>
    %cst_27 = arith.constant dense<0.000000e+00> : vector<4x8xf32>
    %69 = vector.multi_reduction <add>, %68, %cst_27 [2] : vector<4x8x8xf32> to vector<4x8xf32>
    %70 = vector.shape_cast %69 : vector<4x8xf32> to vector<4x8x1xf32>
    %71 = tpu.reciprocal %70 : vector<4x8x1xf32> -> vector<4x8x1xf32>
    %72 = vector.broadcast %71 : vector<4x8x1xf32> to vector<4x8x8xf32>
    %73 = arith.mulf %68, %72 : vector<4x8x8xf32>
    %c0_28 = arith.constant 0 : index
    %c0_29 = arith.constant 0 : index
    %c0_30 = arith.constant 0 : index
    %c0_31 = arith.constant 0 : index
    %74 = vector.load %arg11[%c0_28, %c0_29, %c0_30, %c0_31] : memref<1x4x8x8xf32, #tpu.memory_space<vmem>>, vector<1x4x8x8xf32>
    %75 = vector.shape_cast %74 : vector<1x4x8x8xf32> to vector<4x8x8xf32>
    %76 = vector.shape_cast %73 : vector<4x8x8xf32> to vector<1x4x8x8xf32>
    tpu.vector_store %arg11[%c0_28, %c0_29, %c0_30, %c0_31], %76 {strides = array<i32>} : memref<1x4x8x8xf32, #tpu.memory_space<vmem>>, vector<1x4x8x8xf32>,
    "tpu.trace_start"() <{level = 10 : i32, message = "hqk,hkd->hqd"}> : () -> ()
    %cst_32 = arith.constant dense<0.000000e+00> : vector<4x8x8xf32>
    %77 = tpu.matmul %73, %62, %cst_32 {dimension_numbers = #tpu.dot_dimension_numbers<[2], [1], [1], [2], [0, 0, 0, 1, 1, 2], [0], [0]>} : vector<4x8x8xf32>, vector<4x8x8xf32>, vector<4x8x8xf32> -> vector<4x8x8xf32>
    "tpu.trace_stop"() : () -> ()
    %c0_33 = arith.constant 0 : index
    %c0_34 = arith.constant 0 : index
    %c0_35 = arith.constant 0 : index
    %78 = vector.load %arg7[%c0_33, %c0_34, %c0_35] : memref<4x8x32xf32, #tpu.memory_space<vmem>>, vector<4x8x32xf32>
    "tpu.trace_start"() <{level = 10 : i32, message = "hqd,hdm->hqm"}> : () -> ()
    %cst_36 = arith.constant dense<0.000000e+00> : vector<4x8x32xf32>
    %79 = tpu.matmul %77, %78, %cst_36 {dimension_numbers = #tpu.dot_dimension_numbers<[2], [1], [1], [2], [0, 0, 0, 1, 1, 2], [0], [0]>} : vector<4x8x8xf32>, vector<4x8x32xf32>, vector<4x8x32xf32> -> vector<4x8x32xf32>
    "tpu.trace_stop"() : () -> ()
    %cst_37 = arith.constant dense<0.000000e+00> : vector<8x32xf32>
    %80 = vector.multi_reduction <add>, %79, %cst_37 [0] : vector<4x8x32xf32> to vector<8x32xf32>
    %81 = arith.addf %80, %1 : vector<8x32xf32>
    %c0_38 = arith.constant 0 : index
    %c0_39 = arith.constant 0 : index
    %c0_40 = arith.constant 0 : index
    %82 = vector.load %arg10[%c0_38, %c0_39, %c0_40] : memref<1x8x32xf32, #tpu.memory_space<vmem>>, vector<1x8x32xf32>
    %83 = vector.shape_cast %82 : vector<1x8x32xf32> to vector<8x32xf32>
    %84 = vector.shape_cast %81 : vector<8x32xf32> to vector<1x8x32xf32>
    tpu.vector_store %arg10[%c0_38, %c0_39, %c0_40], %84 {strides = array<i32>} : memref<1x8x32xf32, #tpu.memory_space<vmem>>, vector<1x8x32xf32>,
    return
  }
  func.func @transform_0(%arg0: i32) -> (i32, i32, i32) {
    %c0_i32 = arith.constant 0 : i32
    %c0_i32_0 = arith.constant 0 : i32
    %c0_i32_1 = arith.constant 0 : i32
    return %arg0, %c0_i32, %c0_i32_0 : i32, i32, i32
  }
  func.func @transform_1(%arg0: i32) -> (i32, i32, i32) {
    %c0_i32 = arith.constant 0 : i32
    %c0_i32_0 = arith.constant 0 : i32
    %c0_i32_1 = arith.constant 0 : i32
    return %arg0, %c0_i32, %c0_i32_0 : i32, i32, i32
  }
  func.func @transform_2(%arg0: i32) -> (i32, i32, i32) {
    %c0_i32 = arith.constant 0 : i32
    %c0_i32_0 = arith.constant 0 : i32
    %c0_i32_1 = arith.constant 0 : i32
    return %arg0, %c0_i32, %c0_i32_0 : i32, i32, i32
  }
  func.func @transform_3(%arg0: i32) -> (i32, i32) {
    %c0_i32 = arith.constant 0 : i32
    %c0_i32_0 = arith.constant 0 : i32
    %c0_i32_1 = arith.constant 0 : i32
    return %c0_i32, %c0_i32_0 : i32, i32
  }
  func.func @transform_4(%arg0: i32) -> (i32, i32) {
    %c0_i32 = arith.constant 0 : i32
    %c0_i32_0 = arith.constant 0 : i32
    %c0_i32_1 = arith.constant 0 : i32
    return %c0_i32, %c0_i32_0 : i32, i32
  }
  func.func @transform_5(%arg0: i32) -> (i32, i32) {
    %c0_i32 = arith.constant 0 : i32
    %c0_i32_0 = arith.constant 0 : i32
    %c0_i32_1 = arith.constant 0 : i32
    return %c0_i32, %c0_i32_0 : i32, i32
  }
  func.func @transform_6(%arg0: i32) -> (i32, i32, i32) {
    %c0_i32 = arith.constant 0 : i32
    %c0_i32_0 = arith.constant 0 : i32
    %c0_i32_1 = arith.constant 0 : i32
    %c0_i32_2 = arith.constant 0 : i32
    return %c0_i32, %c0_i32_0, %c0_i32_1 : i32, i32, i32
  }
  func.func @transform_7(%arg0: i32) -> (i32, i32) {
    %c0_i32 = arith.constant 0 : i32
    %c0_i32_0 = arith.constant 0 : i32
    %c0_i32_1 = arith.constant 0 : i32
    return %c0_i32, %c0_i32_0 : i32, i32
  }
  func.func @transform_8(%arg0: i32) -> (i32, i32) {
    %c0_i32 = arith.constant 0 : i32
    %c0_i32_0 = arith.constant 0 : i32
    %c0_i32_1 = arith.constant 0 : i32
    return %c0_i32, %c0_i32_0 : i32, i32
  }
  func.func @transform_9(%arg0: i32) -> (i32, i32, i32) {
    %c0_i32 = arith.constant 0 : i32
    %c0_i32_0 = arith.constant 0 : i32
    %c0_i32_1 = arith.constant 0 : i32
    return %arg0, %c0_i32, %c0_i32_0 : i32, i32, i32
  }
  func.func @transform_10(%arg0: i32) -> (i32, i32, i32, i32) {
    %c0_i32 = arith.constant 0 : i32
    %c0_i32_0 = arith.constant 0 : i32
    %c0_i32_1 = arith.constant 0 : i32
    %c0_i32_2 = arith.constant 0 : i32
    return %arg0, %c0_i32, %c0_i32_0, %c0_i32_1 : i32, i32, i32, i32
  }
}

</mosaic_0001>

<bundles_post_ra>
// kernel: tpu_custom_call.1
= control target key start
LH: loop header
LB: loop body
LE: loop exit
PB: predicated region body
PF: predicated region fallthrough
CT: control target
= control target key end

     0   :  { %s3082_s0 = inlined_call_operand.hbm [shape: f32[2,8,32], index: 0, kind: input, shape index: {}]   ;;  %s3083_s1 = inlined_call_operand.hbm [shape: f32[2,8,32], index: 1, kind: input, shape index: {}]   ;;  %s3084_s2 = inlined_call_operand.hbm [shape: f32[2,8,32], index: 2, kind: input, shape index: {}]   ;;  %s3085_s3 = inlined_call_operand.hbm [shape: f32[32,32], index: 3, kind: input, shape index: {}]   ;;  %s3086_s4 = inlined_call_operand.hbm [shape: f32[32,32], index: 4, kind: input, shape index: {}]   ;;  %s3087_s5 = inlined_call_operand.hbm [shape: f32[32,32], index: 5, kind: input, shape index: {}]   ;;  %s3088_s6 = inlined_call_operand.hbm [shape: f32[4,8,32], index: 6, kind: input, shape index: {}]   ;;  %s3089_s7 = inlined_call_operand.vmem [shape: f32[1,32], index: 7, kind: input, shape index: {}]   ;;  %s3090_s8 = inlined_call_operand.vmem [shape: f32[1,32], index: 8, kind: input, shape index: {}]   ;;  %s3091_s9 = inlined_call_operand.hbm [shape: f32[2,8,32], index: 9, kind: output, shape index: {0}]   ;;  %s3092_s10 = inlined_call_operand.hbm [shape: f32[2,4,8,8], index: 10, kind: output, shape index: {1}]  }
   0x1   :  { %3113 = sst [smem:[#allocation28_spill]] %s3082_s0 }
   0x2   :  { %3114 = sst [smem:[#allocation29_spill]] %s3083_s1 }
   0x3   :  { %3115 = sst [smem:[#allocation30_spill]] %s3085_s3 }
   0x4   :  { %3116 = sst [smem:[#allocation31_spill]] %s3087_s5 }
   0x5   :  { %3117 = sst [smem:[#allocation32_spill]] %s3091_s9 }
   0x6   :  { %16 = vsyncpa [#allocation3], 0 }
   0x7   :  { %18 = vsyncpa [#allocation3 + $0x1], 0 }
   0x8   :  { %19 = vsyncpa [#allocation6], 0 }
   0x9   :  { %21 = vsyncpa [#allocation6 + $0x1], 0 }
   0xa   :  { %22 = vsyncpa [#allocation9], 0 }
   0xb   :  { %23 = vsyncpa [#allocation12], 0 }
   0xc   :  { %24 = vsyncpa [#allocation4], 0 }
   0xd   :  { %26 = vsyncpa [#allocation4 + $0x1], 0 }
   0xe   :  { %27 = vsyncpa [#allocation16], 0 }
   0xf   :  { %29 = vsyncpa [#allocation16 + $0x1], 0  ;;  %s2646_s13 = smov 0   ;;  %s2648_s14 = smov 0  }
  0x10   :  { %s2650_s15 = smov 0   ;;  %s2652_s16 = smov 0  }
  0x11 LB: > { %3118 = sst [smem:[#allocation23_spill]] %s2559_s13  ;;  %s2573_s17 = smov [#allocation8]   ;;  %s2571_s16 = sphi %s2652_s16, %s3154_s16   ;;  %s2567_s15 = sphi %s2650_s15, %s3158_s15   ;;  %s2563_s14 = sphi %s2648_s14, %s3157_s14   ;;  %s2559_s13 = sphi %s2646_s13, %s3156_s13  }
  0x12   : > { %3119 = sst [smem:[#allocation24_spill]] %s2571_s16  ;;  %s308_s18 = sshll.u32 %s2573_s17, 4  ;;  %s309_s18 = int_to_ptr.vmem [resolvable:$true] %s308_s18 }
  0x13   : > { %s2667_s19 = sadd.s32 4294967295, %s2571_s16   ;;  %p1965_p0 = scmp.ge.s32.totalorder %s2571_s16, 1 }
  0x14   : > { %p3105_p1 = scmp.eq.s32.totalorder %s2667_s19, 0  ;;  %p296_p2 = scmp.lt.s32.totalorder %s2571_s16, 3 }
  0x15   : > { %s2574_s21 = smov [#allocation11]   ;;  %s2288_s24 = scalar_lea.vmem %s309_s18, 512 }
  0x16   : > { %p2672_p3 = pnand %p1965_p0, %p296_p2  ;;  %s334_s22 = sshll.u32 %s2574_s21, 4  ;;  %s335_s22 = int_to_ptr.vmem [resolvable:$true] %s334_s22 }
  0x17   : > { %p2289_p8 = scmp.ne.s32.totalorder %s309_s18, %s2288_s24  ;;  %p2296_p11 = scmp.lt.s32.totalorder %s309_s18, %s309_s18 }
  0x18   : > { %s3120_s20 = scalar_select %p2672_p3, 1, 0 }
  0x19   : > { %p2174_p5 = pneg %p2672_p3  ;;  %p2297_p12 = scmp.lt.s32.totalorder %s2288_s24, %s2288_s24 }
  0x1b   : > { %p2681_p6 = pnand %p2174_p5, %p3105_p1  ;;  %p2298_p13 = por %p2297_p12, %p2296_p11 }
  0x1d   : > { %s3121_s23 = scalar_select %p2681_p6, 1, 0 }
  0x1e   : > { %p3093_p7 = pneg %p2681_p6 }
  0x20   : > { %p2291_p9 = pnand %p2289_p8, %p3093_p7 }
  0x22   : > { %p2292_p10 = pneg %p2291_p9 }
  0x24   : > { %p2299_p0 = pnand %p2298_p13, %p2292_p10 }
  0x26   : > { %2302 = shalt.err (!%p2299_p0)
}
  0x27   : > { %s3094_s25 = smov 128   ;;  %s3096_s26 = smov 8  }
  0x28   : > { %s3122_s3 = sld [smem:[#allocation30_spill]]  ;;  %s2314_s29 = scalar_lea.vmem %s335_s22, 512 }
  0x29   : > { %p2315_p2 = scmp.ne.s32.totalorder %s335_s22, %s2314_s29  ;;  %p2322_p9 = scmp.lt.s32.totalorder %s335_s22, %s335_s22 }
  0x2a   : > { %p2323_p10 = scmp.lt.s32.totalorder %s2314_s29, %s2314_s29 }
  0x2b   : > { %p2317_p5 = pnand %p2315_p2, %p3093_p7 }
  0x2c   : > { %p2324_p11 = por %p2323_p10, %p2322_p9 }
  0x2d   : > { %p2318_p8 = pneg %p2317_p5 }
  0x2e   : > { %2177 = dma.hbm_to_vmem [thread:$0]  (!%p2681_p6), %s3122_s3, 512, %s309_s18, [#allocation9], %s3094_s25, %s3094_s25, %s3096_s26  }
  0x2f   : > { %p2325_p12 = pnand %p2324_p11, %p2318_p8 }
  0x31   : > { %2328 = shalt.err (!%p2325_p12)
}
  0x32   : > { %s3123_s5 = sld [smem:[#allocation31_spill]]  ;;  %s1964_s12 = sadd.s32 4294967294, %s2571_s16  }
  0x33   : > { %s2711_s17 = sadd.s32 1, %s2571_s16   ;;  %s42_s21 = sadd.s32 1, %s2567_s15 }
  0x34   : > { %3124 = sst [smem:[#allocation25_spill]] %s2711_s17  ;;  %s39_s18 = ssub.s32 %s2571_s16, %s2711_s17 }
  0x35   : > { %p40_p13 = scmp.eq.s32.totalorder %s39_s18, 0  ;;  %p49_p0 = scmp.ne.s32.totalorder %s2567_s15, %s2563_s14 }
  0x36   : > { %p50_p2 = scmp.eq.s32.totalorder %s2571_s16, 0  ;;  %p55_p5 = scmp.ne.s32.totalorder %s2563_s14, %s2559_s13 }
  0x37   : > { %s2722_s24 = scalar_select %p40_p13, %s2567_s15, %s42_s21  }
  0x38   : > { %2183 = dma.hbm_to_vmem [thread:$0]  (!%p2681_p6), %s3123_s5, 512, %s335_s22, [#allocation12], %s3094_s25, %s3094_s25, %s3096_s26  }
  0x39   : > { %3125 = sst [smem:[#allocation26_spill]] %s2722_s24  ;;  %p51_p8 = por %p50_p2, %p49_p0 }
  0x3a   : > { %p2726_p9 = por %p3105_p1, %p55_p5  ;;  %p257_p10 = scmp.eq.s32.totalorder %s2667_s19, 1 }
  0x3b   : > { %p263_p11 = scmp.eq.s32.totalorder %s1964_s12, 1  ;;  %p2208_p12 = scmp.lt.s32.totalorder %s2571_s16, 2 }
  0x3c   : > { %s3126_s27 = scalar_select %p2726_p9, 1, 0 }
  0x3d   : > { %s3098_s22 = sand.u32 1, %s2567_s15   ;;  %p2733_p4 = por %p257_p10, %p49_p0 }
  0x3e   : > { %p2737_p7 = por %p263_p11, %p55_p5  ;;  %s2743_s30 = sshll.u32 %s3098_s22, 3 }
  0x3f   : > { %s3127_s28 = scalar_select %p2733_p4, 1, 0 }
  0x40   : > { %s3128_s29 = scalar_select %p2737_p7, 1, 0 }
  0x41   : > { %s2746_s11 = sshll.u32 %s2571_s16, 7  ;;  %p2748_p13 = pnand %p2208_p12, %p51_p8 }
  0x42   : > { %3129 = sst [smem:[#allocation27_spill]] %s3128_s29  ;;  %s385_s12 = sand.u32 1, %s2571_s16  }
  0x43   : > { %s3131_s1 = sld [smem:[#allocation29_spill]]  ;;  %s389_s22 = scalar_lea.vmem [#allocation5], %s2743_s30 }
  0x44   : > { %s396_s3 = sshll.u32 %s389_s22, 4  ;;  %s2577_s5 = smov [#allocation10]   ;;  %s2760_s3 = int_to_ptr.vmem [resolvable:$true] %s396_s3 }
  0x45   : > { %s321_s24 = sshll.u32 %s2577_s5, 4  ;;  %s2762_s17 = scalar_lea.sflag [#allocation6], %s385_s12  ;;  %s322_s24 = int_to_ptr.vmem [resolvable:$true] %s321_s24 }
  0x46   : > { %p2768_p2 = pneg %p2748_p13 }
  0x48   : > { %s3132_s16 = scalar_select %p2768_p2, 1, 0 }
  0x49   : > { %s2757_s26 = scalar_lea.hbm %s3131_s1, %s2746_s11  ;;  %s2334_s22 = scalar_lea.hbm %s3131_s1, 256 }
  0x4a   : > { %s2329_s29 = scalar_lea.hbm %s2757_s26, 128  ;;  %p2335_p10 = scmp.lt.s32.totalorder %s2757_s26, %s3131_s1 }
  0x4b   : > { %p2330_p0 = scmp.ne.s32.totalorder %s2757_s26, %s2329_s29  ;;  %p2336_p11 = scmp.lt.s32.totalorder %s2334_s22, %s2329_s29 }
  0x4d   : > { %p2332_p5 = pnand %p2768_p2, %p2330_p0  ;;  %p2337_p12 = por %p2336_p11, %p2335_p10 }
  0x4f   : > { %p2333_p8 = pneg %p2332_p5 }
  0x51   : > { %p2338_p1 = pnand %p2337_p12, %p2333_p8 }
  0x53   : > { %2341 = shalt.err (!%p2338_p1)
}
  0x54   : > { %s2342_s5 = scalar_lea.vmem %s2760_s3, 128  ;;  %s2578_s12 = smov [#allocation5]  }
  0x55   : > { %p2343_p7 = scmp.ne.s32.totalorder %s2760_s3, %s2342_s5  ;;  %s2347_s25 = sshll.u32 %s2578_s12, 4  ;;  %s2348_s25 = int_to_ptr.vmem [resolvable:$false] %s2347_s25 }
  0x56   : > { %s2349_s21 = scalar_lea.vmem %s2348_s25, 256  ;;  %p2350_p4 = scmp.lt.s32.totalorder %s2760_s3, %s2348_s25 }
  0x57   : > { %p2345_p0 = pnand %p2343_p7, %p2768_p2  ;;  %p2351_p9 = scmp.lt.s32.totalorder %s2349_s21, %s2342_s5 }
  0x59   : > { %p2346_p5 = pneg %p2345_p0  ;;  %p2352_p3 = por %p2351_p9, %p2350_p4 }
  0x5b   : > { %p2353_p6 = pnand %p2352_p3, %p2346_p5 }
  0x5d   : > { %2356 = shalt.err (!%p2353_p6)
}
  0x5e   : > { %2193 = dma.hbm_to_vmem [thread:$0]  (!%p2748_p13), %s2757_s26, 128, %s2760_s3, %s2762_s17  }
  0x5f   : > { %s2368_s9 = scalar_lea.vmem %s322_s24, 512  ;;  %p3133_p7 = scmp.ne.s32.totalorder %s3121_s23, 0 }
  0x60   : > { %p2369_p1 = scmp.ne.s32.totalorder %s322_s24, %s2368_s9  ;;  %p2376_p12 = scmp.lt.s32.totalorder %s322_s24, %s322_s24 }
  0x61   : > { %p3134_p8 = pneg %p3133_p7  ;;  %p2377_p0 = scmp.lt.s32.totalorder %s2368_s9, %s2368_s9 }
  0x63   : > { %p2371_p10 = pnand %p2369_p1, %p3134_p8  ;;  %p2378_p2 = por %p2377_p0, %p2376_p12 }
  0x65   : > { %p2372_p11 = pneg %p2371_p10 }
  0x67   : > { %p2379_p4 = pnand %p2378_p2, %p2372_p11 }
  0x69   : > { %2382 = shalt.err (!%p2379_p4)
}
  0x6a   : > { %s3135_s13 = smov 8   ;;  %s3136_s29 = smov 128  }
  0x6b   : > { %2180 = dma.hbm_to_vmem [thread:$0]  (!%p3133_p7), %s3086_s4, 512, %s322_s24, [#allocation9], %s3136_s29, %s3136_s29, %s3135_s13  }
  0x6c   : > { %s2579_s3 = smov [#allocation13]   ;;  %p3137_p6 = pmov %p3134_p8 }
  0x6d   : > { %s347_s26 = sshll.u32 %s2579_s3, 4  ;;  %s348_s26 = int_to_ptr.vmem [resolvable:$true] %s347_s26 }
  0x6e   : > { %s2394_s12 = scalar_lea.vmem %s348_s26, 512  ;;  %p2402_p5 = scmp.lt.s32.totalorder %s348_s26, %s348_s26 }
  0x6f   : > { %p2395_p3 = scmp.ne.s32.totalorder %s348_s26, %s2394_s12  ;;  %p2403_p1 = scmp.lt.s32.totalorder %s2394_s12, %s2394_s12 }
  0x71   : > { %p2397_p9 = pnand %p2395_p3, %p3137_p6  ;;  %p2404_p8 = por %p2403_p1, %p2402_p5 }
  0x73   : > { %p2398_p2 = pneg %p2397_p9 }
  0x75   : > { %p2405_p10 = pnand %p2404_p8, %p2398_p2 }
  0x77   : > { %2408 = shalt.err (!%p2405_p10)
}
  0x78   : > { %2186 = dma.hbm_to_vmem [thread:$0]  (!%p3133_p7), %s3088_s6, 512, %s348_s26, [#allocation12], %s3136_s29, %s3136_s29, %s3135_s13  }
  0x79   : > { %s3138_s0 = sld [smem:[#allocation28_spill]]  ;;  %s371_s23 = scalar_lea.vmem [#allocation2], %s2743_s30 }
  0x7a   : > { %s378_s5 = sshll.u32 %s371_s23, 4  ;;  %s3139_s3 = sand.u32 1, %s2567_s15   ;;  %s379_s5 = int_to_ptr.vmem [resolvable:$true] %s378_s5 }
  0x7b   : > { %s368_s12 = scalar_lea.sflag [#allocation3], %s3139_s3  ;;  %p3140_p12 = scmp.ne.s32.totalorder %s3132_s16, 0 }
  0x7f   : > { %s2817_s22 = scalar_lea.hbm %s3138_s0, %s2746_s11  ;;  %s2414_s29 = scalar_lea.hbm %s3138_s0, 256 }
  0x80   : > { %s2409_s1 = scalar_lea.hbm %s2817_s22, 128  ;;  %p2415_p7 = scmp.lt.s32.totalorder %s2817_s22, %s3138_s0 }
  0x81   : > { %p2410_p11 = scmp.ne.s32.totalorder %s2817_s22, %s2409_s1  ;;  %p2416_p3 = scmp.lt.s32.totalorder %s2414_s29, %s2409_s1 }
  0x83   : > { %p2412_p0 = pnand %p2410_p11, %p3140_p12  ;;  %p2417_p6 = por %p2416_p3, %p2415_p7 }
  0x85   : > { %p2413_p4 = pneg %p2412_p0 }
  0x87   : > { %p2418_p9 = pnand %p2417_p6, %p2413_p4 }
  0x89   : > { %2421 = shalt.err (!%p2418_p9)
}
  0x8a   : > { %s2422_s21 = scalar_lea.vmem %s379_s5, 128  ;;  %s2580_s9 = smov [#allocation2]  }
  0x8b   : > { %p2423_p2 = scmp.ne.s32.totalorder %s379_s5, %s2422_s21  ;;  %s2427_s23 = sshll.u32 %s2580_s9, 4  ;;  %s2428_s23 = int_to_ptr.vmem [resolvable:$false] %s2427_s23 }
  0x8c   : > { %s2429_s3 = scalar_lea.vmem %s2428_s23, 256  ;;  %p2430_p8 = scmp.lt.s32.totalorder %s379_s5, %s2428_s23 }
  0x8d   : > { %p2425_p5 = pnand %p2423_p2, %p3140_p12  ;;  %p2431_p10 = scmp.lt.s32.totalorder %s2429_s3, %s2422_s21 }
  0x8f   : > { %p2426_p1 = pneg %p2425_p5  ;;  %p2432_p11 = por %p2431_p10, %p2430_p8 }
  0x91   : > { %p2433_p0 = pnand %p2432_p11, %p2426_p1 }
  0x93   : > { %2436 = shalt.err (!%p2433_p0)
}
  0x94   : > { %2190 = dma.hbm_to_vmem [thread:$0]  (!%p2748_p13), %s2817_s22, 128, %s379_s5, %s368_s12  }
  0x95   : > { %s412_s13 = scalar_lea.hbm %s3084_s2, %s2746_s11  ;;  %s407_s29 = scalar_lea.vmem [#allocation7], %s2743_s30 }
  0x96   : > { %s414_s26 = sshll.u32 %s407_s29, 4  ;;  %s2437_s25 = scalar_lea.hbm %s412_s13, 128  ;;  %s415_s26 = int_to_ptr.vmem [resolvable:$true] %s414_s26 }
  0x97   : > { %p2438_p4 = scmp.ne.s32.totalorder %s412_s13, %s2437_s25  ;;  %s2442_s23 = scalar_lea.hbm %s3084_s2, 256 }
  0x98   : > { %p2443_p6 = scmp.lt.s32.totalorder %s412_s13, %s3084_s2  ;;  %p2444_p9 = scmp.lt.s32.totalorder %s2442_s23, %s2437_s25 }
  0x99   : > { %p2440_p7 = pnand %p2438_p4, %p3140_p12 }
  0x9a   : > { %p2445_p2 = por %p2444_p9, %p2443_p6 }
  0x9b   : > { %p2441_p3 = pneg %p2440_p7 }
  0x9d   : > { %p2446_p5 = pnand %p2445_p2, %p2441_p3 }
  0x9f   : > { %2449 = shalt.err (!%p2446_p5)
}
  0xa0   : > { %s2450_s30 = scalar_lea.vmem %s415_s26, 128  ;;  %s2581_s11 = smov [#allocation7]  }
  0xa1   : > { %p2451_p1 = scmp.ne.s32.totalorder %s415_s26, %s2450_s30  ;;  %s2455_s22 = sshll.u32 %s2581_s11, 4  ;;  %s2456_s22 = int_to_ptr.vmem [resolvable:$false] %s2455_s22 }
  0xa2   : > { %s2457_s5 = scalar_lea.vmem %s2456_s22, 256  ;;  %p2458_p11 = scmp.lt.s32.totalorder %s415_s26, %s2456_s22 }
  0xa3   : > { %p2453_p8 = pnand %p2451_p1, %p3140_p12  ;;  %p2459_p0 = scmp.lt.s32.totalorder %s2457_s5, %s2450_s30 }
  0xa5   : > { %p2454_p10 = pneg %p2453_p8  ;;  %p2460_p4 = por %p2459_p0, %p2458_p11 }
  0xa7   : > { %p2461_p7 = pnand %p2460_p4, %p2454_p10 }
  0xa9   : > { %2464 = shalt.err (!%p2461_p7)
}
  0xaa   : > { %2196 = dma.hbm_to_vmem [thread:$0]  (!%p2748_p13), %s412_s13, 128, %s415_s26, %s2762_s17  }
  0xab   : > { %p3141_p3 = scmp.ne.s32.totalorder %s3120_s20, 0 }
  0xac   : > { %s2859_s0 = sand.u32 (!%p3141_p3), 1, %s2563_s14   ;;  %p3142_p12 = scmp.ne.s32.totalorder (!%p3141_p3), %s3126_s27, 0 }
  0xad   : > { %423 = sbr.rel (%p3141_p3) target bundleno = 1768 (0x6e8), region = 56  ;;  %s2862_s16 = sshll.u32 (!%p3141_p3), %s2859_s0, 3 }
  0xae   : > { %s426_s12 = scalar_lea.sflag (!%p3141_p3), [#allocation3], %s2859_s0  ;;  %s429_s1 = scalar_lea.vmem (!%p3141_p3), [#allocation2], %s2862_s16 }
  0xb2   : > { %2534 = dma.done.wait (%p3142_p12), %s426_s12, 128  }
  0xb3   : > { %2536 = vsyncadd (%p3142_p12), %s426_s12, 4294967168  ;;  %s434_s20 = sand.u32 1, %s2667_s19   ;;  %s438_s18 = scalar_lea.vmem [#allocation5], %s2862_s16 }
  0xb4   : > { %s435_s17 = scalar_lea.sflag [#allocation6], %s434_s20 }
  0xb5   : > { %2538 = dma.done.wait (%p3142_p12), %s435_s17, 256  }
  0xb6   : > { %2540 = vsyncadd (%p3142_p12), %s435_s17, 4294967040  ;;  %s447_s24 = scalar_lea.vmem [#allocation7], %s2862_s16  ;;  %p3143_p13 = scmp.eq.s32.totalorder %s2667_s19, 0 }
  0xb8   : > { %2542 = dma.done.wait (%p3143_p13), [#allocation9], 1024   ;;  %p3144_p6 = pmov %p3143_p13 }
  0xba   : > { %2544 = vsyncadd (%p3144_p6), [#allocation9], 4294966272  ;;  %p3145_p9 = pmov %p3144_p6 }
  0xbb   : > { %p3146_p2 = pmov %p3144_p6 }
  0xbc   : > { %2546 = dma.done.wait (%p3145_p9), [#allocation12], 1024  }
  0xbd   : > { %2548 = vsyncadd (%p3146_p2), [#allocation12], 4294966272  ;;  %vm518_vm0 = vcmask 261120   ;;  %v2885_v0 = vld [vmem:[%s429_s1] sm:$0xff]  ;;  %v2582_v7 = vmov 0.0   ;;  %vm2583_vm1 = vmmov 0  }
  0xbe   : > { %v519_v1 = vsel %vm518_vm0, %v2885_v0, 0.0  ;;  %2066 = vmatprep.subr.mxu1 %v2582_v7  ;;  %v629_v8 = vld [vmem:[#allocation10 + $0x18] sm:$0xff]  ;;  %v628_v9 = vld [vmem:[#allocation10 + $0x10] sm:$0xff]  ;;  %2055 = vmatprep.subr.mxu0 %v2582_v7  ;;  %v627_v11 = vld [vmem:[#allocation10 + $0x8] sm:$0xff]  ;;  %vm804_vm2 = vcmask 64512   ;;  %s2584_s25 = smov 120  }
  0xbf   : > { %520 = vadd.xlane.f32.xlu0 %v519_v1  ;;  %2067 = vmatpush3.msra.mxu1 %v629_v8  ;;  %v552_v10 = vld [vmem:[#allocation8 + $0x18] sm:$0xff]  ;;  %v551_v12 = vld [vmem:[#allocation8 + $0x10] sm:$0xff]  ;;  %v550_v13 = vld [vmem:[#allocation8 + $0x8] sm:$0xff]  ;;  %s2585_s21 = smov 112   ;;  %s2586_s9 = smov 104  }
  0xc0   : > { %2074 = vmatprep.mubr.msk.f32.mxu1 %vm2583_vm1, %v2582_v7  ;;  %2068 = vmatprep.subr.mxu1 %v2582_v7  ;;  %v626_v14 = vld [vmem:[#allocation10] sm:$0xff]  ;;  %v1987_v21 = vld [vmem:[%s3089_s7] ss:$0 sm:$0xff]  ;;  %v706_v28 = vld [vmem:[#allocation11 + $0x18] sm:$0xff]  ;;  %s1986_s23 = sshll.u32 %s2859_s0, 5  ;;  %s2015_s30 = sshll.u32 %s2667_s19, 9 }
  0xc1   : > { %2056 = vmatpush3.msra.mxu0 %v552_v10  ;;  %2069 = vmatpush3.msra.mxu1 %v628_v9  ;;  %v516_v15 = vld [vmem:[%s438_s18] sm:$0xff]  ;;  %v1988_v23 = vld [vmem:[%s3090_s8] ss:$0 sm:$0xff]  ;;  %s2970_s3 = scalar_lea.vmem [#allocation15], %s1986_s23  ;;  %s3013_s12 = scalar_lea.hbm %s3092_s10, %s2015_s30 }
  0xc2   : > { %2057 = vmatprep.subr.mxu0 %v2582_v7  ;;  %2070 = vmatprep.subr.mxu1 %v2582_v7  ;;  %v549_v16 = vld [vmem:[#allocation8] sm:$0xff]  ;;  %v705_v29 = vld [vmem:[#allocation11 + $0x10] sm:$0xff]  ;;  %v704_v30 = vld [vmem:[#allocation11 + $0x8] sm:$0xff]  ;;  %s1778_s11 = sshll.u32 %s2970_s3, 4  ;;  %s1752_s1 = scalar_lea.sflag [#allocation16], %s2859_s0  ;;  %s3015_s11 = int_to_ptr.vmem [resolvable:$true] %s1778_s11 }
  0xc3   : > { %2058 = vmatpush3.msra.mxu0 %v551_v12  ;;  %2071 = vmatpush3.msra.mxu1 %v627_v11  ;;  %v703_v31 = vld [vmem:[#allocation11] sm:$0xff]  ;;  %v517_v32 = vld [vmem:[%s447_s24] sm:$0xff]  ;;  %s2465_s20 = scalar_lea.vmem %s3015_s11, 512  ;;  %p3147_p1 = scmp.ne.s32.totalorder %s3127_s28, 0 }
  0xc4   : > { %2059 = vmatprep.subr.mxu0 %v2582_v7  ;;  %2072 = vmatprep.subr.mxu1 %v2582_v7  ;;  %p2466_p5 = scmp.ne.s32.totalorder %s3015_s11, %s2465_s20  ;;  %s2587_s17 = smov [#allocation15]  }
  0xc5   : > { %2060 = vmatpush3.msra.mxu0 %v550_v13  ;;  %2073 = vmatpush3.msra.mxu1 %v626_v14  ;;  %s2469_s18 = sshll.u32 %s2587_s17, 4  ;;  %s2470_s18 = int_to_ptr.vmem [resolvable:$false] %s2469_s18 }
  0xc6   : > { %2061 = vmatprep.subr.mxu0 %v2582_v7  ;;  %2075 = vmatmul.mubr.msk.f32.vlgmr.msra.gmra.mxu1 %vm518_vm0, %v516_v15  ;;  %p2467_p8 = pnand %p2466_p5, %p3147_p1  ;;  %s2471_s24 = scalar_lea.vmem %s2470_s18, 1024 }
  0xc7   : > { %2062 = vmatpush3.msra.mxu0 %v549_v16  ;;  %2063 = vmatprep.mubr.msk.f32.mxu0 %vm2583_vm1, %v2582_v7  ;;  %p2472_p11 = scmp.lt.s32.totalorder %s3015_s11, %s2470_s18  ;;  %p2473_p0 = scmp.lt.s32.totalorder %s2471_s24, %s2465_s20 }
  0xc8   : > { %2088 = vmatprep.subr.mxu1 %v2582_v7  ;;  %2090 = vmatprep.mubr.msk.f32.mxu1 %vm2583_vm1, %v2582_v7  ;;  %p2468_p10 = pneg %p2467_p8 }
  0xc9   : > { %2077 = vmatprep.subr.mxu0 %v2582_v7  ;;  %p2474_p4 = por %p2473_p0, %p2472_p11 }
  0xcb   : > { %p2475_p7 = pnand %p2474_p4, %p2468_p10 }
 0x148   : > { %v521_v2 = vpop.xlane.xlu0 %520 }
 0x149   : > { %v523_v3 = vmul.f32 0.03125, %v521_v2 }
 0x14b   : > { %v524_v4 = vsub.f32 %v2885_v0, %v523_v3 }
 0x14d   : > { %v525_v5 = vmul.f32 %v524_v4, %v524_v4 }
 0x14f   : > { %v526_v6 = vsel %vm518_vm0, %v525_v5, 0.0 }
 0x150   : > { %527 = vadd.xlane.f32.xlu0 %v526_v6 }
 0x186   : > { %v699_v26 = vpop.f32.mrf.mxu1 }
 0x187   : > { %788 = vrot.lane.b32.xlu1 %v699_v26, %s2584_s25  ;;  %2089 = vmatpush3.xpose.msk.msra.mxu1 %vm804_vm2, %v699_v26 }
 0x188   : > { %v2076_v27 = vpop.f32.mrf.mxu1  ;;  %2093 = vmatprep.subr.mxu1 %v2582_v7 }
 0x18b   : > { %790 = vrot.lane.b32.xlu1 %v699_v26, %s2585_s21 }
 0x18f   : > { %792 = vrot.lane.b32.xlu1 %v699_v26, %s2586_s9 }
 0x1d9   : > { %v528_v17 = vpop.xlane.xlu0 %527 }
 0x1da   : > { %v529_v18 = vmul.f32 0.03125, %v528_v17 }
 0x1dc   : > { %v530_v19 = vadd.f32 1e-06, %v529_v18 }
 0x1de   : > { %2259 = vrsqrt.f32 %v530_v19 }
 0x1eb   : > { %v2260_v20 = vpop.eup %2259 }
 0x1ec   : > { %v532_v22 = vmul.f32 %v2260_v20, %v524_v4 }
 0x1ee   : > { %v540_v24 = vmul.f32 %v1987_v21, %v532_v22 }
 0x1f0   : > { %v548_v25 = vadd.f32 %v1988_v23, %v540_v24  ;;  %v1441_v24 = vld [vmem:[#allocation13] sm:$0xff] }
 0x1f2   : > { %2064 = vmatmul.mubr.msk.f32.vlgmr.msra.gmra.mxu0 %vm518_vm0, %v548_v25 }
 0x1f3   : > { %2085 = vmatprep.mubr.msk.f32.mxu0 %vm2583_vm1, %v2582_v7  ;;  %2078 = vmatpush3.msra.mxu0 %v706_v28 }
 0x1f4   : > { %2079 = vmatprep.subr.mxu0 %v2582_v7 }
 0x1f5   : > { %2080 = vmatpush3.msra.mxu0 %v705_v29  ;;  %v1442_v29 = vld [vmem:[#allocation13 + $0x8] sm:$0xff] }
 0x1f6   : > { %2081 = vmatprep.subr.mxu0 %v2582_v7 }
 0x1f7   : > { %2082 = vmatpush3.msra.mxu0 %v704_v30  ;;  %v1443_v30 = vld [vmem:[#allocation13 + $0x10] sm:$0xff] }
 0x1f8   : > { %2083 = vmatprep.subr.mxu0 %v2582_v7 }
 0x1f9   : > { %2084 = vmatpush3.msra.mxu0 %v703_v31  ;;  %v789_v33 = vpop.permute.xlu1 %788 }
 0x1fa   : > { %2098 = vmatprep.subr.mxu0 %v2582_v7  ;;  %2086 = vmatmul.mubr.msk.f32.vlgmr.msra.gmra.mxu0 %vm518_vm0, %v517_v32 }
 0x1fb   : > { %2100 = vmatprep.mubr.msk.f32.mxu0 %vm2583_vm1, %v2582_v7 }
 0x1fd   : > { %v791_v34 = vpop.permute.xlu1 %790 }
 0x1fe   : > { %2099 = vmatpush3.xpose.msk.msra.mxu0 %vm804_vm2, %v791_v34 }
 0x1ff   : > { %2108 = vmatprep.subr.mxu0 %v2582_v7 }
 0x201   : > { %v793_v39 = vpop.permute.xlu1 %792 }
 0x2b2   : > { %v622_v35 = vpop.f32.mrf.mxu0 }
 0x2b3   : > { %783 = vrot.lane.b32.xlu1 %v622_v35, %s2585_s21  ;;  %781 = vrot.lane.b32.xlu0 %v622_v35, %s2584_s25 }
 0x2b4   : > { %2091 = vmatmul.mubr.msk.f32.vlgmr.msra.gmra.mxu1 %vm804_vm2, %v622_v35  ;;  %v2065_v36 = vpop.f32.mrf.mxu0 }
 0x2b5   : > { %2094 = vmatpush3.xpose.msk.msra.mxu1 %vm804_vm2, %v789_v33  ;;  %2095 = vmatprep.mubr.msk.f32.mxu1 %vm2583_vm1, %v2582_v7  ;;  %v1444_v33 = vld [vmem:[#allocation13 + $0x18] sm:$0xff] }
 0x2b6   : > { %2103 = vmatprep.subr.mxu1 %v2582_v7 }
 0x2b7   : > { %785 = vrot.lane.b32.xlu1 %v622_v35, %s2586_s9 }
 0x2ba   : > { %v2943_v37 = vpop.f32.mrf.mxu0 }
 0x2bc   : > { %v2087_v38 = vpop.f32.mrf.mxu0 }
 0x325   : > { %v784_v40 = vpop.permute.xlu1 %783  ;;  %v782_v41 = vpop.permute.xlu0 %781 }
 0x326   : > { %2096 = vmatmul.mubr.msk.f32.vlgmr.msra.gmra.mxu1 %vm804_vm2, %v782_v41  ;;  %2101 = vmatmul.mubr.msk.f32.vlgmr.msra.gmra.mxu0 %vm804_vm2, %v784_v40 }
 0x327   : > { %2104 = vmatpush3.xpose.msk.msra.mxu1 %vm804_vm2, %v793_v39  ;;  %2105 = vmatprep.mubr.msk.f32.mxu1 %vm2583_vm1, %v2582_v7 }
 0x328   : > { %2109 = vmatpush3.msra.mxu0 %v2943_v37  ;;  %2110 = vmatprep.mubr.msk.f32.mxu0 %vm2583_vm1, %v2582_v7 }
 0x329   : > { %v786_v42 = vpop.permute.xlu1 %785  ;;  %2113 = vmatprep.subr.mxu1 %v2582_v7  ;;  %2118 = vmatprep.subr.mxu0 %v2582_v7 }
 0x32a   : > { %2106 = vmatmul.mubr.msk.f32.vlgmr.msra.gmra.mxu1 %vm804_vm2, %v786_v42 }
 0x32b   : > { %2115 = vmatprep.mubr.msk.f32.mxu1 %vm2583_vm1, %v2582_v7 }
 0x374   : > { %v875_v43 = vpop.f32.mrf.mxu1 }
 0x375   : > { %v1101_v44 = vsel %vm804_vm2, %v875_v43, -inf }
 0x376   : > { %1102 = vmax.xlane.f32.xlu1 %v1101_v44  ;;  %v2092_v45 = vpop.f32.mrf.mxu1 }
 0x3e6   : > { %v949_v46 = vpop.f32.mrf.mxu1  ;;  %v1023_v47 = vpop.f32.mrf.mxu0 }
 0x3e7   : > { %v1104_v48 = vsel %vm804_vm2, %v949_v46, -inf  ;;  %v1107_v49 = vsel %vm804_vm2, %v1023_v47, -inf }
 0x3e8   : > { %1105 = vmax.xlane.f32.xlu0 %v1104_v48  ;;  %v2097_v50 = vpop.f32.mrf.mxu1  ;;  %1108 = vmax.xlane.f32.xlu1 %v1107_v49  ;;  %v2102_v51 = vpop.f32.mrf.mxu0 }
 0x3ea   : > { %v1097_v52 = vpop.f32.mrf.mxu1 }
 0x3eb   : > { %v1110_v53 = vsel %vm804_vm2, %v1097_v52, -inf }
 0x3ec   : > { %v2107_v54 = vpop.f32.mrf.mxu1  ;;  %1111 = vmax.xlane.f32.xlu1 %v1110_v53 }
 0x3ff   : > { %v1103_v55 = vpop.xlane.xlu1 %1102 }
 0x400   : > { %v1113_v56 = vsub.f32 %v875_v43, %v1103_v55 }
 0x402   : > { %v1117_v57 = vmul.f32 1.442695, %v1113_v56 }
 0x404   : > { %2261 = vpow2.f32 %v1117_v57 }
 0x411   : > { %v2262_v58 = vpop.eup %2261 }
 0x412   : > { %v1125_v59 = vsel %vm804_vm2, %v2262_v58, 0.0 }
 0x413   : > { %1126 = vadd.xlane.f32.xlu0 %v1125_v59 }
 0x471   : > { %v1106_v60 = vpop.xlane.xlu0 %1105  ;;  %v1109_v61 = vpop.xlane.xlu1 %1108 }
 0x472   : > { %v1114_v62 = vsub.f32 %v949_v46, %v1106_v60  ;;  %v1115_v63 = vsub.f32 %v1023_v47, %v1109_v61 }
 0x474   : > { %v1119_v1 = vmul.f32 1.442695, %v1114_v62  ;;  %v1121_v2 = vmul.f32 1.442695, %v1115_v63 }
 0x475   : > { %v1112_v9 = vpop.xlane.xlu1 %1111 }
 0x476   : > { %2263 = vpow2.f32 %v1119_v1  ;;  %v1116_v10 = vsub.f32 %v1097_v52, %v1112_v9 }
 0x477   : > { %2265 = vpow2.f32 %v1121_v2 }
 0x478   : > { %v1123_v11 = vmul.f32 1.442695, %v1116_v10 }
 0x483   : > { %v2264_v3 = vpop.eup %2263 }
 0x484   : > { %v2266_v4 = vpop.eup %2265  ;;  %v1128_v5 = vsel %vm804_vm2, %v2264_v3, 0.0 }
 0x485   : > { %1129 = vadd.xlane.f32.xlu1 %v1128_v5  ;;  %v1131_v6 = vsel %vm804_vm2, %v2266_v4, 0.0 }
 0x486   : > { %1132 = vadd.xlane.f32.xlu0 %v1131_v6 }
 0x496   : > { %798 = vrot.lane.b32.xlu1 %v2943_v37, %s2585_s21 }
 0x49c   : > { %v1127_v8 = vpop.xlane.xlu0 %1126  ;;  %795 = vrot.lane.b32.xlu0 %v2943_v37, %s2584_s25 }
 0x49d   : > { %2267 = vrcp.f32 %v1127_v8 }
 0x49e   : > { %2269 = vpow2.f32 %v1123_v11 }
 0x4aa   : > { %v2268_v12 = vpop.eup %2267 }
 0x4ab   : > { %v1141_v13 = vmul.f32 %v2268_v12, %v2262_v58  ;;  %v2270_v14 = vpop.eup %2269 }
 0x4ac   : > { %v1134_v15 = vsel %vm804_vm2, %v2270_v14, 0.0 }
 0x4ad   : > { %1145 = vst.msk [vmem:[%s2970_s3] sm:$0xff] %vm804_vm2, %v1141_v13  ;;  %2111 = vmatmul.mubr.msk.f32.vlgmr.msra.gmra.mxu0 %vm804_vm2, %v1141_v13 }
 0x4ae   : > { %2120 = vmatprep.mubr.msk.f32.mxu0 %vm2583_vm1, %v2582_v7 }
 0x4ba   : > { %1135 = vadd.xlane.f32.xlu1 %v1134_v15 }
 0x4cb   : > { %801 = vrot.lane.b32.xlu1 %v2943_v37, %s2586_s9 }
 0x50e   : > { %v1130_v16 = vpop.xlane.xlu1 %1129 }
 0x50f   : > { %v1133_v17 = vpop.xlane.xlu0 %1132  ;;  %2271 = vrcp.f32 %v1130_v16 }
 0x510   : > { %2273 = vrcp.f32 %v1133_v17 }
 0x512   : > { %v799_v18 = vpop.permute.xlu1 %798 }
 0x513   : > { %v796_v19 = vpop.permute.xlu0 %795  ;;  %2119 = vmatpush3.msra.mxu0 %v799_v18 }
 0x514   : > { %2114 = vmatpush3.msra.mxu1 %v796_v19  ;;  %2128 = vmatprep.subr.mxu0 %v2582_v7 }
 0x515   : > { %2123 = vmatprep.subr.mxu1 %v2582_v7 }
 0x51c   : > { %v2272_v20 = vpop.eup %2271 }
 0x51d   : > { %v2274_v21 = vpop.eup %2273  ;;  %v1142_v22 = vmul.f32 %v2272_v20, %v2264_v3 }
 0x51e   : > { %v1143_v23 = vmul.f32 %v2274_v21, %v2266_v4 }
 0x51f   : > { %1146 = vst.msk [vmem:[%s2970_s3 + $0x8] sm:$0xff] %vm804_vm2, %v1142_v22  ;;  %2116 = vmatmul.mubr.msk.f32.vlgmr.msra.gmra.mxu1 %vm804_vm2, %v1142_v22 }
 0x520   : > { %1147 = vst.msk [vmem:[%s2970_s3 + $0x10] sm:$0xff] %vm804_vm2, %v1143_v23  ;;  %2121 = vmatmul.mubr.msk.f32.vlgmr.msra.gmra.mxu0 %vm804_vm2, %v1143_v23  ;;  %2125 = vmatprep.mubr.msk.f32.mxu1 %vm2583_vm1, %v2582_v7 }
 0x521   : > { %2129 = vmatpush3.msra.mxu0 %v1441_v24  ;;  %2130 = vmatprep.mubr.msk.f32.mxu0 %vm2583_vm1, %v2582_v7 }
 0x522   : > { %2138 = vmatprep.subr.mxu0 %v2582_v7 }
 0x543   : > { %v1136_v25 = vpop.xlane.xlu1 %1135 }
 0x544   : > { %2275 = vrcp.f32 %v1136_v25 }
 0x547   : > { %v802_v26 = vpop.permute.xlu1 %801 }
 0x548   : > { %2124 = vmatpush3.msra.mxu1 %v802_v26 }
 0x549   : > { %2133 = vmatprep.subr.mxu1 %v2582_v7 }
 0x551   : > { %v2276_v27 = vpop.eup %2275 }
 0x552   : > { %v1144_v28 = vmul.f32 %v2276_v27, %v2270_v14 }
 0x554   : > { %1148 = vst.msk [vmem:[%s2970_s3 + $0x18] sm:$0xff] %vm804_vm2, %v1144_v28  ;;  %2126 = vmatmul.mubr.msk.f32.vlgmr.msra.gmra.mxu1 %vm804_vm2, %v1144_v28 }
 0x555   : > { %2135 = vmatprep.mubr.msk.f32.mxu1 %vm2583_vm1, %v2582_v7  ;;  %2134 = vmatpush3.msra.mxu1 %v1442_v29 }
 0x556   : > { %2143 = vmatprep.subr.mxu1 %v2582_v7 }
 0x56d   : > { %v1218_v31 = vpop.f32.mrf.mxu0 }
 0x56e   : > { %2131 = vmatmul.mubr.msk.f32.vlgmr.msra.gmra.mxu0 %vm804_vm2, %v1218_v31 }
 0x56f   : > { %v2112_v32 = vpop.f32.mrf.mxu0  ;;  %2139 = vmatpush3.msra.mxu0 %v1443_v30  ;;  %2140 = vmatprep.mubr.msk.f32.mxu0 %vm2583_vm1, %v2582_v7 }
 0x5df   : > { %v1291_v34 = vpop.f32.mrf.mxu1 }
 0x5e0   : > { %v1364_v35 = vpop.f32.mrf.mxu0  ;;  %2136 = vmatmul.mubr.msk.f32.vlgmr.msra.gmra.mxu1 %vm804_vm2, %v1291_v34 }
 0x5e1   : > { %2141 = vmatmul.mubr.msk.f32.vlgmr.msra.gmra.mxu0 %vm804_vm2, %v1364_v35  ;;  %v2117_v36 = vpop.f32.mrf.mxu1  ;;  %2144 = vmatpush3.msra.mxu1 %v1444_v33 }
 0x5e2   : > { %v2122_v37 = vpop.f32.mrf.mxu0  ;;  %2145 = vmatprep.mubr.msk.f32.mxu1 %vm2583_vm1, %v2582_v7 }
 0x614   : > { %v1437_v38 = vpop.f32.mrf.mxu1 }
 0x615   : > { %2146 = vmatmul.mubr.msk.f32.vlgmr.msra.gmra.mxu1 %vm804_vm2, %v1437_v38 }
 0x616   : > { %v2127_v39 = vpop.f32.mrf.mxu1 }
 0x62e   : > { %v1514_v40 = vpop.f32.mrf.mxu0 }
 0x630   : > { %v2132_v41 = vpop.f32.mrf.mxu0 }
 0x631   : > { %2478 = shalt.err (!%p2475_p7)
}
 0x632   : > { %s2479_s27 = scalar_lea.hbm %s3013_s12, 512  ;;  %s2483_s26 = scalar_lea.hbm %s3092_s10, 1024 }
 0x633   : > { %p2480_p3 = scmp.ne.s32.totalorder %s3013_s12, %s2479_s27  ;;  %p2484_p6 = scmp.lt.s32.totalorder %s3013_s12, %s3092_s10 }
 0x634   : > { %p2485_p9 = scmp.lt.s32.totalorder %s2483_s26, %s2479_s27 }
 0x635   : > { %p2481_p12 = pnand %p2480_p3, %p3147_p1 }
 0x636   : > { %p2486_p2 = por %p2485_p9, %p2484_p6 }
 0x637   : > { %p2482_p13 = pneg %p2481_p12 }
 0x639   : > { %p2487_p5 = pnand %p2486_p2, %p2482_p13 }
 0x63b   : > { %2490 = shalt.err (!%p2487_p5)
}
 0x63c   : > { %s2588_s9 = smov 128   ;;  %s2589_s23 = smov 8   ;;  %v1737_v46 = vsel %vm518_vm0, %v1514_v40, 0.0 }
 0x63d   : > { %2171 = dma.vmem_to_hbm [thread:$0]  (%p3147_p1), %s3015_s11, 512, %s3013_s12, %s1752_s1, %s2588_s9, %s2588_s9, %s2589_s23  }
 0x63e   : > { %s2010_s3 = sshll.u32 %s2667_s19, 7  ;;  %s507_s30 = scalar_lea.vmem [#allocation14], %s2862_s16 }
 0x63f   : > { %s1765_s11 = sshll.u32 %s507_s30, 4  ;;  %s3148_s12 = sld [smem:[#allocation32_spill]]  ;;  %s1766_s11 = int_to_ptr.vmem [resolvable:$true] %s1765_s11 }
 0x640   : > { %s1747_s20 = scalar_lea.sflag [#allocation4], %s2859_s0  ;;  %s2491_s17 = scalar_lea.vmem %s1766_s11, 128 }
 0x641   : > { %p2492_p8 = scmp.ne.s32.totalorder %s1766_s11, %s2491_s17  ;;  %s2590_s19 = smov [#allocation14]  }
 0x642   : > { %s2495_s16 = sshll.u32 %s2590_s19, 4  ;;  %s2496_s16 = int_to_ptr.vmem [resolvable:$false] %s2495_s16 }
 0x643   : > { %p2493_p10 = pnand %p2492_p8, %p3147_p1  ;;  %s2497_s18 = scalar_lea.vmem %s2496_s16, 256 }
 0x644   : > { %p2498_p0 = scmp.lt.s32.totalorder %s1766_s11, %s2496_s16  ;;  %p2499_p4 = scmp.lt.s32.totalorder %s2497_s18, %s2491_s17 }
 0x645   : > { %s1763_s1 = scalar_lea.hbm %s3148_s12, %s2010_s3  ;;  %p2494_p11 = pneg %p2493_p10 }
 0x646   : > { %p2500_p7 = por %p2499_p4, %p2498_p0 }
 0x648   : > { %p2501_p3 = pnand %p2500_p7, %p2494_p11 }
 0x6a0   : > { %v1587_v7 = vpop.f32.mrf.mxu1 }
 0x6a1   : > { %v1660_v42 = vpop.f32.mrf.mxu0  ;;  %v1738_v45 = vsel %vm518_vm0, %v1587_v7, 0.0 }
 0x6a2   : > { %v2137_v43 = vpop.f32.mrf.mxu1  ;;  %v1739_v47 = vadd.f32 %v1738_v45, %v1737_v46  ;;  %v1740_v48 = vsel %vm518_vm0, %v1660_v42, 0.0 }
 0x6a3   : > { %v2142_v44 = vpop.f32.mrf.mxu0 }
 0x6a4   : > { %v1741_v49 = vadd.f32 %v1740_v48, %v1739_v47 }
 0x6d5   : > { %v1733_v50 = vpop.f32.mrf.mxu1 }
 0x6d6   : > { %v1742_v51 = vsel %vm518_vm0, %v1733_v50, 0.0 }
 0x6d7   : > { %v1743_v52 = vadd.f32 %v1742_v51, %v1741_v49  ;;  %v2147_v53 = vpop.f32.mrf.mxu1 }
 0x6d9   : > { %v1744_v54 = vadd.f32 %v1743_v52, %v2885_v0 }
 0x6db   : > { %1745 = vst.msk [vmem:[%s507_s30] sm:$0xff] %vm518_vm0, %v1744_v54 }
 0x6dc   : > { %2504 = shalt.err (!%p2501_p3)
}
 0x6dd   : > { %s2505_s24 = scalar_lea.hbm %s1763_s1, 128  ;;  %s2509_s13 = scalar_lea.hbm %s3148_s12, 256 }
 0x6de   : > { %p2506_p12 = scmp.ne.s32.totalorder %s1763_s1, %s2505_s24  ;;  %p2510_p9 = scmp.lt.s32.totalorder %s1763_s1, %s3148_s12 }
 0x6df   : > { %p2511_p2 = scmp.lt.s32.totalorder %s2509_s13, %s2505_s24 }
 0x6e0   : > { %p2507_p13 = pnand %p2506_p12, %p3147_p1 }
 0x6e1   : > { %p2512_p5 = por %p2511_p2, %p2510_p9 }
 0x6e2   : > { %p2508_p6 = pneg %p2507_p13 }
 0x6e4   : > { %p2513_p8 = pnand %p2512_p5, %p2508_p6 }
 0x6e6   : > { %2516 = shalt.err (!%p2513_p8)
}
 0x6e7   : > { %2170 = dma.vmem_to_hbm [thread:$0]  (%p3147_p1), %s1766_s11, 128, %s1763_s1, %s1747_s20  }
 0x6e8 PF: > { %s3149_s25 = sld [smem:[#allocation23_spill]] }
 0x6e9   : > { %s3150_s21 = sld [smem:[#allocation27_spill]] }
 0x6ea   : > { %s3151_s9 = sld [smem:[#allocation24_spill]] }
 0x6ee   : > { %s1793_s23 = sand.u32 1, %s3149_s25  }
 0x6ef   : > { %p3152_p10 = scmp.ne.s32.totalorder %s3150_s21, 0  ;;  %s1794_s3 = scalar_lea.sflag [#allocation4], %s1793_s23 }
 0x6f0   : > { %p3153_p11 = scmp.ge.s32.totalorder %s3151_s9, 2 }
 0x6f2   : > { %p2198_p0 = pnand %p3153_p11, %p3152_p10 }
 0x6f4   : > { %p2199_p4 = pneg %p2198_p0 }
 0x6f6   : > { %2550 = dma.done.wait (%p2199_p4), %s1794_s3, 128  }
 0x6f7   : > { %2552 = vsyncadd (%p2199_p4), %s1794_s3, 4294967168  ;;  %s1803_s30 = scalar_lea.sflag [#allocation16], %s1793_s23 }
 0x6f8   : > { %2554 = dma.done.wait (%p2199_p4), %s1803_s30, 512  }
 0x6f9   : > { %2556 = vsyncadd (%p2199_p4), %s1803_s30, 4294966784  ;;  %s3154_s16 = sld [smem:[#allocation25_spill]]  ;;  %s3156_s13 = smov %s2563_s14 }
 0x6fa   : > { %s3155_s28 = sld [smem:[#allocation26_spill]]  ;;  %s3157_s14 = smov %s2567_s15 }
 0x6ff   : > { %p32_p1 = scmp.ge.s32.totalorder %s3154_s16, 4  }
 0x700   : > { %s3158_s15 = smov %s3155_s28 }
 0x701   :  { %34 = sbr.rel (!%p32_p1) target bundleno = 17 (0x11), region = 158 }
 0x706   :  { %1808 = vsyncpa [#allocation3], 1 }
 0x707   :  { %1810 = vsyncpa [#allocation3 + $0x1], 1 }
 0x708   :  { %1811 = vsyncpa [#allocation6], 1 }
 0x709   :  { %1813 = vsyncpa [#allocation6 + $0x1], 1 }
 0x70a   :  { %1814 = vsyncpa [#allocation9], 1 }
 0x70b   :  { %1815 = vsyncpa [#allocation12], 1 }
 0x70c   :  { %1816 = vsyncpa [#allocation4], 1 }
 0x70d   :  { %1818 = vsyncpa [#allocation4 + $0x1], 1 }
 0x70e   :  { %1819 = vsyncpa [#allocation16], 1 }
 0x70f   :  { %1821 = vsyncpa [#allocation16 + $0x1], 1 }

</bundles_post_ra>
